<compile_context>
chip_gen: v7x
topology: tpu7x:2x2x1
jax: 0.10.0
libtpu: 0.0.40
codegen_flags: <defaults>
</compile_context>

<pallas_src>
import jax
import jax.numpy as jnp
from jax.experimental import pallas as pl
from jax.experimental.pallas import tpu as pltpu

E = 64            # config.vae_embed_size
ACTION_IN = 300   # action width
ONEHOT = 133      # 17 domain + 34 action + 82 slot columns of `mask`
H = 96            # 3 branches x 32 hidden units (block-diagonal packing)


def _round_up(x, m):
    return (x + m - 1) // m * m


def _leaky(x):
    # LeakyReLU(0.2): max(x, 0.2*x) == where(x > 0, x, 0.2*x); one mul + one max.
    return jnp.maximum(x, 0.2 * x)


# ----------------------------------------------------------------------------
# Kernel
# ----------------------------------------------------------------------------
def _woz_disc_kernel(action_ref, svae_ref, wf_ref, w1_ref, w2_ref, bias_ref,
                     out_ref):
    """One batch tile: action [tb,300], state_vae [tb,192] -> out [tb,3]."""
    f32 = jnp.float32
    wdt = wf_ref.dtype                     # f32 or bf16 (weight dtype)

    bias = bias_ref[...]                   # [3, 96] f32: b_rep | b1 | b2(pad)
    b_rep = bias[0:1, :]                   # [1, 96]
    b1 = bias[1:2, :]                      # [1, 96]
    b2 = bias[2:3, :3]                     # [1, 3]

    # emb = action @ (mask @ blockdiag(W_rep.T)) + b_rep          -> [tb, 96]
    emb = jnp.dot(action_ref[...].astype(wdt), wf_ref[...],
                  preferred_element_type=f32) + b_rep

    # dis_k: LeakyReLU -> Dropout(id) -> Linear(96,32) -> LeakyReLU
    #        -> Dropout(id) -> Linear(32,1), all 3 branches fused.
    # cat(vae, emb) @ W1.T == vae @ W1[:192] + emb @ W1[192:288].
    h1 = (jnp.dot(_leaky(svae_ref[...]).astype(wdt), w1_ref[0:3 * E, :],
                  preferred_element_type=f32)
          + jnp.dot(_leaky(emb).astype(wdt), w1_ref[3 * E:3 * E + H, :],
                    preferred_element_type=f32)
          + b1)                                                    # [tb, 96]
    h2 = _leaky(h1)
    logits = jnp.dot(h2.astype(wdt), w2_ref[...],
                     preferred_element_type=f32) + b2              # [tb, 3]

    # Last-dim of 3 => masked partial store; bytes are tiny, accepted (reviewed).
    out_ref[...] = jnp.clip(jax.nn.sigmoid(logits), 1e-7, 1.0 - 1e-7)


# ----------------------------------------------------------------------------
# Wrapper
# ----------------------------------------------------------------------------
def woz_discriminator(state_vae, action, params, *, block_b=256):
    """state_vae [B, 3E] f32, action [B, 300] f32 -> [B, 3] f32."""
    B = state_vae.shape[0]
    assert action.shape == (B, ACTION_IN)
    assert state_vae.shape == (B, 3 * E)

    wf, w1, w2, bias = (params["w_fused"], params["w1"], params["w2"],
                        params["bias"])

    # Batch tile: 256 fills the v6e/v7x 256-row MXU (pass block_b=128 on v5e);
    # shrink for small batches so tiny demos are not over-padded.
    tb = min(block_b, _round_up(B, 8))
    b_pad = _round_up(B, tb)
    if b_pad != B:
        action = jnp.pad(action, ((0, b_pad - B), (0, 0)))
        state_vae = jnp.pad(state_vae, ((0, b_pad - B), (0, 0)))
    grid = (b_pad // tb,)

    act_spec = pl.BlockSpec((tb, ACTION_IN), lambda b: (b, 0))
    vae_spec = pl.BlockSpec((tb, 3 * E), lambda b: (b, 0))
    out_spec = pl.BlockSpec((tb, 3), lambda b: (b, 0))
    # Weights/biases: full block, constant index -> DMA'd once, VMEM-resident.
    wf_spec = pl.BlockSpec(wf.shape, lambda b: (0, 0))
    w1_spec = pl.BlockSpec(w1.shape, lambda b: (0, 0))
    w2_spec = pl.BlockSpec(w2.shape, lambda b: (0, 0))
    bias_spec = pl.BlockSpec(bias.shape, lambda b: (0, 0))

    nbytes = lambda a: int(a.size) * a.dtype.itemsize
    weight_bytes = sum(nbytes(a) for a in (wf, w1, w2, bias))
    per_row_bytes = (ACTION_IN * action.dtype.itemsize
                     + 3 * E * state_vae.dtype.itemsize + 3 * 4)
    tile_bytes = tb * per_row_bytes
    cost = pl.CostEstimate(
        flops=2 * b_pad * (ACTION_IN * H + 3 * E * H + H * H + H * 3),
        transcendentals=b_pad * 3,
        bytes_accessed=weight_bytes + b_pad * per_row_bytes)

    out = pl.pallas_call(
        _woz_disc_kernel,
        out_shape=jax.ShapeDtypeStruct((b_pad, 3), jnp.float32),
        grid=grid,
        in_specs=[act_spec, vae_spec, wf_spec, w1_spec, w2_spec, bias_spec],
        out_specs=out_spec,
        compiler_params=pltpu.CompilerParams(
            dimension_semantics=("parallel",),
            vmem_limit_bytes=int(weight_bytes + 8 * tile_bytes + (8 << 20))),
        cost_estimate=cost,
    )(action, state_vae, wf, w1, w2, bias)
    return out[:B]


# ----------------------------------------------------------------------------
# Parameters (synthetic, PyTorch layout) and packing
# ----------------------------------------------------------------------------
def _linear_init(key, out_f, in_f):
    k1, k2 = jax.random.split(key)
    bound = 1.0 / (in_f ** 0.5)
    w = jax.random.uniform(k1, (out_f, in_f), jnp.float32, -bound, bound)
    b = jax.random.uniform(k2, (out_f,), jnp.float32, -bound, bound)
    return w, b


def init_raw_params(key):
    """Deterministic synthetic parameters mirroring the nn.Module layout."""
    keys = jax.random.split(key, 12)
    # TODO(synk): the original module loads `mask` (300x133 one-hot map) from a
    # pickle file; synthesize a deterministic sparse 0/1 mask instead.
    mask = (jax.random.uniform(keys[0], (ACTION_IN, ONEHOT)) < 0.1).astype(jnp.float32)
    d_rep = _linear_init(keys[1], 32, 17)
    a_rep = _linear_init(keys[2], 32, 34)
    s_rep = _linear_init(keys[3], 32, 82)
    dis = []
    for i in range(3):
        w1, b1 = _linear_init(keys[4 + 2 * i], 32, E + 32)
        w2, b2 = _linear_init(keys[5 + 2 * i], 1, 32)
        dis.append((w1, b1, w2, b2))
    return dict(mask=mask, d_rep=d_rep, a_rep=a_rep, s_rep=s_rep, dis=dis)


def pack_params(raw, param_dtype=jnp.float32):
    """Fold `mask` into the first Linear and pack the 3 branches block-diagonally."""
    (wd, bd), (wa, ba), (ws, bs) = raw["d_rep"], raw["a_rep"], raw["s_rep"]
    w_rep = jnp.zeros((ONEHOT, H), jnp.float32)
    w_rep = (w_rep.at[0:17, 0:32].set(wd.T)
                  .at[17:51, 32:64].set(wa.T)
                  .at[51:133, 64:96].set(ws.T))
    # Constant fold (matmul associativity): (action@mask)@w_rep == action@(mask@w_rep)
    w_fused = jnp.dot(raw["mask"], w_rep, precision=jax.lax.Precision.HIGHEST)

    w1 = jnp.zeros((3 * E + H, H), jnp.float32)   # rows 0:192 vae-part, 192:288 emb-part
    w2 = jnp.zeros((H, 3), jnp.float32)
    b1 = jnp.zeros((H,), jnp.float32)
    b2 = jnp.zeros((3,), jnp.float32)
    for i, (w1_i, b1_i, w2_i, b2_i) in enumerate(raw["dis"]):
        w1 = w1.at[i * E:(i + 1) * E, i * 32:(i + 1) * 32].set(w1_i[:, :E].T)
        w1 = w1.at[3 * E + i * 32:3 * E + (i + 1) * 32,
                   i * 32:(i + 1) * 32].set(w1_i[:, E:].T)
        w2 = w2.at[i * 32:(i + 1) * 32, i].set(w2_i[0])
        b1 = b1.at[i * 32:(i + 1) * 32].set(b1_i)
        b2 = b2.at[i].set(b2_i[0])

    b_rep = jnp.concatenate([bd, ba, bs])         # [96]
    bias = jnp.zeros((3, H), jnp.float32)
    bias = bias.at[0, :].set(b_rep).at[1, :].set(b1).at[2, :3].set(b2)

    return dict(w_fused=w_fused.astype(param_dtype),
                w1=w1.astype(param_dtype),
                w2=w2.astype(param_dtype),
                bias=bias)                         # biases stay f32


# ----------------------------------------------------------------------------
# Pure-JAX references
# ----------------------------------------------------------------------------
def reference(state_vae, action, raw):
    """Faithful mirror of the PyTorch forward (dropout = identity)."""
    emb_onehot = action @ raw["mask"]
    d_emb = emb_onehot[:, :17] @ raw["d_rep"][0].T + raw["d_rep"][1]
    a_emb = emb_onehot[:, 17:51] @ raw["a_rep"][0].T + raw["a_rep"][1]
    s_emb = emb_onehot[:, 51:] @ raw["s_rep"][0].T + raw["s_rep"][1]
    vaes = [state_vae[:, :E], state_vae[:, E:2 * E], state_vae[:, 2 * E:]]
    embs = [d_emb, a_emb, s_emb]
    outs = []
    for i in range(3):
        x = jnp.concatenate([vaes[i], embs[i]], axis=-1)
        w1, b1, w2, b2 = raw["dis"][i]
        h = _leaky(x) @ w1.T + b1
        o = _leaky(h) @ w2.T + b2
        outs.append(jax.nn.sigmoid(o))
    return jnp.clip(jnp.concatenate(outs, axis=-1), 1e-7, 1.0 - 1e-7)


def reference_fused(state_vae, action, params):
    """Plain-JAX version of exactly the fused math the kernel performs."""
    f32 = jnp.float32
    wdt = params["w_fused"].dtype
    bias = params["bias"]
    emb = jnp.dot(state_vae.dtype.type(0) + action.astype(wdt), params["w_fused"],
                  preferred_element_type=f32) + bias[0:1, :]
    h1 = (jnp.dot(_leaky(state_vae).astype(wdt), params["w1"][:3 * E],
                  preferred_element_type=f32)
          + jnp.dot(_leaky(emb).astype(wdt), params["w1"][3 * E:],
                    preferred_element_type=f32)
          + bias[1:2, :])
    logits = jnp.dot(_leaky(h1).astype(wdt), params["w2"],
                     preferred_element_type=f32) + bias[2:3, :3]
    return jnp.clip(jax.nn.sigmoid(logits), 1e-7, 1.0 - 1e-7)


if __name__ == "__main__":
    key = jax.random.PRNGKey(0)
    kp, kx, ka, kx2, ka2 = jax.random.split(key, 5)
    raw = init_raw_params(kp)

    B = 8
    state_vae = jax.random.normal(kx, (B, 3 * E), jnp.float32)
    action = jax.random.uniform(ka, (B, ACTION_IN), jnp.float32)
    ref = reference(state_vae, action, raw)

    # --- f32 weights ---
    p32 = pack_params(raw, jnp.float32)
    out32 = jax.block_until_ready(woz_discriminator(state_vae, action, p32))
    assert out32.shape == (B, 3), out32.shape
    # Kernel vs identical fused math in plain JAX: tight.
    assert jnp.allclose(out32, reference_fused(state_vae, action, p32),
                        atol=1e-4, rtol=1e-4)
    # Fused packing vs PyTorch-ordered reference: algebraically identical;
    # tolerance only covers matmul-precision/association rounding differences.
    assert jnp.allclose(out32, ref, atol=1e-2, rtol=1e-2)

    # --- multi-tile batch grid (exercise padding + pipelined grid path) ---
    B2 = 37
    sv2 = jax.random.normal(kx2, (B2, 3 * E), jnp.float32)
    ac2 = jax.random.uniform(ka2, (B2, ACTION_IN), jnp.float32)
    out2 = jax.block_until_ready(woz_discriminator(sv2, ac2, p32, block_b=16))
    assert out2.shape == (B2, 3), out2.shape
    assert jnp.allclose(out2, reference_fused(sv2, ac2, p32), atol=1e-4, rtol=1e-4)
    assert jnp.allclose(out2, reference(sv2, ac2, raw), atol=1e-2, rtol=1e-2)

    # --- bf16 weights (v6e/v7x MXU configuration) ---
    pbf = pack_params(raw, jnp.bfloat16)
    outbf = jax.block_until_ready(woz_discriminator(state_vae, action, pbf))
    assert outbf.shape == (B, 3), outbf.shape
    assert jnp.allclose(outbf, reference_fused(state_vae, action, pbf),
                        atol=1e-3, rtol=1e-3)
    assert jnp.allclose(outbf, ref, atol=3e-2, rtol=3e-2)

    print("KERNEL_OK")
</pallas_src>

<mosaic_0001>
module attributes {stable_mosaic.version = 11 : i64} {
  func.func @_woz_disc_kernel(%arg0: i32, %arg1: memref<8x300xf32, #tpu.memory_space<vmem>>, %arg2: memref<8x192xf32, #tpu.memory_space<vmem>>, %arg3: memref<300x96xf32, #tpu.memory_space<vmem>>, %arg4: memref<288x96xf32, #tpu.memory_space<vmem>>, %arg5: memref<96x3xf32, #tpu.memory_space<vmem>>, %arg6: memref<3x96xf32, #tpu.memory_space<vmem>>, %arg7: memref<8x3xf32, #tpu.memory_space<vmem>>) attributes {dimension_semantics = [#tpu.dimension_semantics<parallel>], iteration_bounds = array<i64: 1>, scalar_prefetch = 0 : i64, scratch_operands = 0 : i64, tpu.core_type = #tpu.core_type<tc>, window_params = [{transform_indices = @transform_0, window_bounds = array<i64: 8, 300>}, {transform_indices = @transform_1, window_bounds = array<i64: 8, 192>}, {pipeline_mode = #tpu.pipeline_mode<synchronous>, transform_indices = @transform_2, window_bounds = array<i64: 300, 96>}, {pipeline_mode = #tpu.pipeline_mode<synchronous>, transform_indices = @transform_3, window_bounds = array<i64: 288, 96>}, {pipeline_mode = #tpu.pipeline_mode<synchronous>, transform_indices = @transform_4, window_bounds = array<i64: 96, 3>}, {pipeline_mode = #tpu.pipeline_mode<synchronous>, transform_indices = @transform_5, window_bounds = array<i64: 3, 96>}, {transform_indices = @transform_6, window_bounds = array<i64: 8, 3>}]} {
    %c0 = arith.constant 0 : index
    %c0_0 = arith.constant 0 : index
    %0 = vector.load %arg6[%c0, %c0_0] : memref<3x96xf32, #tpu.memory_space<vmem>>, vector<3x96xf32>
    %1 = vector.extract_strided_slice %0 {offsets = [0, 0], sizes = [1, 96], strides = [1, 1]} : vector<3x96xf32> to vector<1x96xf32>
    %2 = vector.extract_strided_slice %0 {offsets = [1, 0], sizes = [1, 96], strides = [1, 1]} : vector<3x96xf32> to vector<1x96xf32>
    %3 = vector.extract_strided_slice %0 {offsets = [2, 0], sizes = [1, 3], strides = [1, 1]} : vector<3x96xf32> to vector<1x3xf32>
    %c0_1 = arith.constant 0 : index
    %c0_2 = arith.constant 0 : index
    %4 = vector.load %arg1[%c0_1, %c0_2] : memref<8x300xf32, #tpu.memory_space<vmem>>, vector<8x300xf32>
    %c0_3 = arith.constant 0 : index
    %c0_4 = arith.constant 0 : index
    %5 = vector.load %arg3[%c0_3, %c0_4] : memref<300x96xf32, #tpu.memory_space<vmem>>, vector<300x96xf32>
    %cst = arith.constant dense<0.000000e+00> : vector<8x96xf32>
    %6 = tpu.matmul %4, %5, %cst {dimension_numbers = #tpu.dot_dimension_numbers<[1], [0], [0], [1], [0, 0, 1, 1], [], []>} : vector<8x300xf32>, vector<300x96xf32>, vector<8x96xf32> -> vector<8x96xf32>
    %7 = vector.broadcast %1 : vector<1x96xf32> to vector<8x96xf32>
    %8 = arith.addf %6, %7 : vector<8x96xf32>
    %c0_5 = arith.constant 0 : index
    %c0_6 = arith.constant 0 : index
    %9 = vector.load %arg2[%c0_5, %c0_6] : memref<8x192xf32, #tpu.memory_space<vmem>>, vector<8x192xf32>
    %cst_7 = arith.constant 2.000000e-01 : f32
    %10 = vector.broadcast %cst_7 : f32 to vector<8x192xf32>
    %11 = arith.mulf %10, %9 : vector<8x192xf32>
    %12 = arith.maximumf %9, %11 : vector<8x192xf32>
    %c0_8 = arith.constant 0 : index
    %c0_9 = arith.constant 0 : index
    %13 = vector.load %arg4[%c0_8, %c0_9] : memref<288x96xf32, #tpu.memory_space<vmem>>, vector<192x96xf32>
    %cst_10 = arith.constant dense<0.000000e+00> : vector<8x96xf32>
    %14 = tpu.matmul %12, %13, %cst_10 {dimension_numbers = #tpu.dot_dimension_numbers<[1], [0], [0], [1], [0, 0, 1, 1], [], []>} : vector<8x192xf32>, vector<192x96xf32>, vector<8x96xf32> -> vector<8x96xf32>
    %cst_11 = arith.constant 2.000000e-01 : f32
    %15 = vector.broadcast %cst_11 : f32 to vector<8x96xf32>
    %16 = arith.mulf %15, %8 : vector<8x96xf32>
    %17 = arith.maximumf %8, %16 : vector<8x96xf32>
    %c192 = arith.constant 192 : index
    %c0_12 = arith.constant 0 : index
    %18 = vector.load %arg4[%c192, %c0_12] : memref<288x96xf32, #tpu.memory_space<vmem>>, vector<96x96xf32>
    %cst_13 = arith.constant dense<0.000000e+00> : vector<8x96xf32>
    %19 = tpu.matmul %17, %18, %cst_13 {dimension_numbers = #tpu.dot_dimension_numbers<[1], [0], [0], [1], [0, 0, 1, 1], [], []>} : vector<8x96xf32>, vector<96x96xf32>, vector<8x96xf32> -> vector<8x96xf32>
    %20 = arith.addf %14, %19 : vector<8x96xf32>
    %21 = vector.broadcast %2 : vector<1x96xf32> to vector<8x96xf32>
    %22 = arith.addf %20, %21 : vector<8x96xf32>
    %cst_14 = arith.constant 2.000000e-01 : f32
    %23 = vector.broadcast %cst_14 : f32 to vector<8x96xf32>
    %24 = arith.mulf %23, %22 : vector<8x96xf32>
    %25 = arith.maximumf %22, %24 : vector<8x96xf32>
    %c0_15 = arith.constant 0 : index
    %c0_16 = arith.constant 0 : index
    %26 = vector.load %arg5[%c0_15, %c0_16] : memref<96x3xf32, #tpu.memory_space<vmem>>, vector<96x3xf32>
    %cst_17 = arith.constant dense<0.000000e+00> : vector<8x3xf32>
    %27 = tpu.matmul %25, %26, %cst_17 {dimension_numbers = #tpu.dot_dimension_numbers<[1], [0], [0], [1], [0, 0, 1, 1], [], []>} : vector<8x96xf32>, vector<96x3xf32>, vector<8x3xf32> -> vector<8x3xf32>
    %28 = vector.broadcast %3 : vector<1x3xf32> to vector<8x3xf32>
    %29 = arith.addf %27, %28 : vector<8x3xf32>
    %30 = arith.negf %29 : vector<8x3xf32>
    %31 = math.exp %30 : vector<8x3xf32>
    %cst_18 = arith.constant 1.000000e+00 : f32
    %32 = vector.broadcast %cst_18 : f32 to vector<8x3xf32>
    %33 = arith.addf %32, %31 : vector<8x3xf32>
    %34 = arith.divf %32, %33 : vector<8x3xf32>
    %cst_19 = arith.constant 1.000000e-07 : f32
    %cst_20 = arith.constant 0.99999988 : f32
    %35 = vector.broadcast %cst_19 : f32 to vector<8x3xf32>
    %36 = arith.maximumf %35, %34 : vector<8x3xf32>
    %37 = vector.broadcast %cst_20 : f32 to vector<8x3xf32>
    %38 = arith.minimumf %37, %36 : vector<8x3xf32>
    %c0_21 = arith.constant 0 : index
    %c0_22 = arith.constant 0 : index
    %39 = vector.load %arg7[%c0_21, %c0_22] : memref<8x3xf32, #tpu.memory_space<vmem>>, vector<8x3xf32>
    tpu.vector_store %arg7[%c0_21, %c0_22], %38 {strides = array<i32>} : memref<8x3xf32, #tpu.memory_space<vmem>>, vector<8x3xf32>,
    return
  }
  func.func @transform_0(%arg0: i32) -> (i32, i32) {
    %c0_i32 = arith.constant 0 : i32
    %c0_i32_0 = arith.constant 0 : i32
    return %arg0, %c0_i32 : i32, i32
  }
  func.func @transform_1(%arg0: i32) -> (i32, i32) {
    %c0_i32 = arith.constant 0 : i32
    %c0_i32_0 = arith.constant 0 : i32
    return %arg0, %c0_i32 : i32, i32
  }
  func.func @transform_2(%arg0: i32) -> (i32, i32) {
    %c0_i32 = arith.constant 0 : i32
    %c0_i32_0 = arith.constant 0 : i32
    %c0_i32_1 = arith.constant 0 : i32
    return %c0_i32, %c0_i32_0 : i32, i32
  }
  func.func @transform_3(%arg0: i32) -> (i32, i32) {
    %c0_i32 = arith.constant 0 : i32
    %c0_i32_0 = arith.constant 0 : i32
    %c0_i32_1 = arith.constant 0 : i32
    return %c0_i32, %c0_i32_0 : i32, i32
  }
  func.func @transform_4(%arg0: i32) -> (i32, i32) {
    %c0_i32 = arith.constant 0 : i32
    %c0_i32_0 = arith.constant 0 : i32
    %c0_i32_1 = arith.constant 0 : i32
    return %c0_i32, %c0_i32_0 : i32, i32
  }
  func.func @transform_5(%arg0: i32) -> (i32, i32) {
    %c0_i32 = arith.constant 0 : i32
    %c0_i32_0 = arith.constant 0 : i32
    %c0_i32_1 = arith.constant 0 : i32
    return %c0_i32, %c0_i32_0 : i32, i32
  }
  func.func @transform_6(%arg0: i32) -> (i32, i32) {
    %c0_i32 = arith.constant 0 : i32
    %c0_i32_0 = arith.constant 0 : i32
    return %arg0, %c0_i32 : i32, i32
  }
}

</mosaic_0001>

<bundles_post_ra>
// kernel: tpu_custom_call.1
= control target key start
LH: loop header
LB: loop body
LE: loop exit
PB: predicated region body
PF: predicated region fallthrough
CT: control target
= control target key end

     0   :  { %v784_v3 = vmov 0.0|0.0   ;;  %vm785_vm0 = vmmov 0   ;;  %v786_v8 = vmov 0.0   ;;  %vm73_vm1 = vcmask 1043456   ;;  %s1137_s2 = inlined_call_operand.vmem [shape: f32[300,96], index: 2, kind: input, shape index: {}]   ;;  %s1138_s0 = inlined_call_operand.vmem [shape: f32[8,300], index: 0, kind: input, shape index: {}]   ;;  %s1139_s3 = inlined_call_operand.vmem [shape: f32[288,96], index: 3, kind: input, shape index: {}]   ;;  %s1140_s1 = inlined_call_operand.vmem [shape: f32[8,192], index: 1, kind: input, shape index: {}]   ;;  %s1141_s5 = inlined_call_operand.vmem [shape: f32[3,96], index: 5, kind: input, shape index: {}]   ;;  %s1142_s4 = inlined_call_operand.vmem [shape: f32[96,3], index: 4, kind: input, shape index: {}]   ;;  %s1143_s6 = inlined_call_operand.vmem [shape: f32[8,3], index: 6, kind: output, shape index: {}]  }
   0x1   :  { %v43_v0 = vld [vmem:[%s1137_s2 + $0x80] sm:$0xff]  ;;  %v44_v1 = vld [vmem:[%s1137_s2 + $0x88] sm:$0xff]  ;;  %694 = vmatprep.subr.bf16.mxu1 %v784_v3  ;;  %v45_v6 = vld [vmem:[%s1137_s2 + $0x90] sm:$0xff]  ;;  %605 = vmatprep.mubr.msk.f32.mxu1 %vm785_vm0, %v786_v8  ;;  %vm787_vm2 = vmmov 1   ;;  %vm69_vm4 = vcmask 359424   ;;  %vm335_vm5 = vcmask 523264  }
   0x2   :  { %v27_v2 = vld [vmem:[%s1137_s2] sm:$0xff]  ;;  %v662_v4 = vpack.c.bf16 %v44_v1, %v43_v0  ;;  %v28_v5 = vld [vmem:[%s1137_s2 + $0x8] sm:$0xff]  ;;  %v46_v7 = vld [vmem:[%s1137_s2 + $0x98] sm:$0xff]  ;;  %vm261_vm6 = vcmask 785408   ;;  %vm513_vm7 = vcmask 23552  }
   0x3   :  { %v664_v9 = vpack.c.bf16 %v28_v5, %v27_v2  ;;  %v666_v10 = vpack.c.bf16 %v46_v7, %v45_v6  ;;  %v29_v11 = vld [vmem:[%s1137_s2 + $0x10] sm:$0xff]  ;;  %v30_v12 = vld [vmem:[%s1137_s2 + $0x18] sm:$0xff]  ;;  %v47_v13 = vld [vmem:[%s1137_s2 + $0xa0] sm:$0xff] }
   0x4   :  { %663 = vmatprep.subr.bf16.mxu0 %v662_v4  ;;  %v48_v14 = vld [vmem:[%s1137_s2 + $0xa8] sm:$0xff]  ;;  %v668_v15 = vpack.c.bf16 %v30_v12, %v29_v11  ;;  %v31_v17 = vld [vmem:[%s1137_s2 + $0x20] sm:$0xff]  ;;  %v49_v19 = vld [vmem:[%s1137_s2 + $0xb0] sm:$0xff] }
   0x5   :  { %665 = vmatpush3.bf16.msra.mxu0 %v664_v9  ;;  %v670_v16 = vpack.c.bf16 %v48_v14, %v47_v13  ;;  %v32_v18 = vld [vmem:[%s1137_s2 + $0x28] sm:$0xff]  ;;  %v50_v20 = vld [vmem:[%s1137_s2 + $0xb8] sm:$0xff]  ;;  %v33_v22 = vld [vmem:[%s1137_s2 + $0x30] sm:$0xff] }
   0x6   :  { %667 = vmatprep.subr.bf16.mxu0 %v666_v10  ;;  %v672_v21 = vpack.c.bf16 %v32_v18, %v31_v17  ;;  %v674_v23 = vpack.c.bf16 %v50_v20, %v49_v19  ;;  %v34_v24 = vld [vmem:[%s1137_s2 + $0x38] sm:$0xff]  ;;  %v59_v25 = vld [vmem:[%s1137_s2 + $0x100] sm:$0xff]  ;;  %v60_v26 = vld [vmem:[%s1137_s2 + $0x108] sm:$0xff] }
   0x7   :  { %v51_v27 = vld [vmem:[%s1137_s2 + $0xc0] sm:$0xff]  ;;  %v52_v28 = vld [vmem:[%s1137_s2 + $0xc8] sm:$0xff]  ;;  %v695_v29 = vpack.c.bf16 %v60_v26, %v59_v25  ;;  %v61_v30 = vld [vmem:[%s1137_s2 + $0x110] sm:$0xff]  ;;  %v676_v32 = vpack.c.bf16 %v34_v24, %v33_v22 }
   0x8   :  { %v62_v31 = vld [vmem:[%s1137_s2 + $0x118] sm:$0xff]  ;;  %v35_v33 = vld [vmem:[%s1137_s2 + $0x40] sm:$0xff]  ;;  %v25_v35 = vld [vmem:[%s1138_s0 + $0x8] sm:$0xff]  ;;  %v678_v36 = vpack.c.bf16 %v52_v28, %v51_v27 }
   0x9   :  { %669 = vmatpush3.bf16.msra.mxu0 %v668_v15  ;;  %696 = vmatpush3.bf16.msra.mxu1 %v695_v29  ;;  %v698_v34 = vpack.c.bf16 %v62_v31, %v61_v30  ;;  %v36_v37 = vld [vmem:[%s1137_s2 + $0x48] sm:$0xff]  ;;  %v63_v38 = vld [vmem:[%s1137_s2 + $0x120] sm:$0xff]  ;;  %v53_v40 = vld [vmem:[%s1137_s2 + $0xd0] sm:$0xff] }
   0xa   :  { %671 = vmatprep.subr.bf16.mxu0 %v670_v16  ;;  %697 = vmatprep.subr.bf16.mxu1 %v784_v3  ;;  %v64_v39 = vld [vmem:[%s1137_s2 + $0x128] sm:$0xf]  ;;  %v54_v41 = vld [vmem:[%s1137_s2 + $0xd8] sm:$0xff]  ;;  %v680_v42 = vpack.c.bf16 %v36_v37, %v35_v33  ;;  %v37_v45 = vld [vmem:[%s1137_s2 + $0x50] sm:$0xff] }
   0xb   :  { %141 = vmatprep.mubr.f32.mxu0 %v25_v35  ;;  %v701_v43 = vpack.c.bf16 %v64_v39, %v63_v38  ;;  %v682_v44 = vpack.c.bf16 %v54_v41, %v53_v40  ;;  %v38_v46 = vld [vmem:[%s1137_s2 + $0x58] sm:$0xff]  ;;  %vm702_vm3 = vmpackc.low %vm73_vm1, %vm787_vm2  ;;  %v55_v47 = vld [vmem:[%s1137_s2 + $0xe0] sm:$0xff] }
   0xc   :  { %v56_v48 = vld [vmem:[%s1137_s2 + $0xe8] sm:$0xff]  ;;  %v249_v49 = vld [vmem:[%s1139_s3 + $0xc0] sm:$0xff]  ;;  %v684_v51 = vpack.c.bf16 %v38_v46, %v37_v45  ;;  %v26_v53 = vld [vmem:[%s1138_s0 + $0x10] sm:$0xff] }
   0xd   :  { %673 = vmatpush3.bf16.msra.mxu0 %v672_v21  ;;  %699 = vmatpush3.bf16.msra.mxu1 %v698_v34  ;;  %v250_v50 = vld [vmem:[%s1139_s3 + $0xc8] sm:$0xff]  ;;  %v39_v52 = vld [vmem:[%s1137_s2 + $0x60] sm:$0xff]  ;;  %v686_v55 = vpack.c.bf16 %v56_v48, %v55_v47  ;;  %v251_v57 = vld [vmem:[%s1139_s3 + $0xd0] sm:$0xff] }
   0xe   :  { %675 = vmatprep.subr.bf16.mxu0 %v674_v23  ;;  %700 = vmatprep.subr.bf16.mxu1 %v784_v3  ;;  %v705_v54 = vpack.c.bf16 %v250_v50, %v249_v49  ;;  %v40_v56 = vld [vmem:[%s1137_s2 + $0x68] sm:$0xff]  ;;  %v252_v58 = vld [vmem:[%s1139_s3 + $0xd8] sm:$0xff]  ;;  %v57_v59 = vld [vmem:[%s1137_s2 + $0xf0] sm:$0xff] }
   0xf   :  { %v58_v60 = vld [vmem:[%s1137_s2 + $0xf8] sm:$0xff]  ;;  %v688_v61 = vpack.c.bf16 %v40_v56, %v39_v52  ;;  %v41_v62 = vld [vmem:[%s1137_s2 + $0x70] sm:$0xff]  ;;  %v708_v63 = vpack.c.bf16 %v252_v58, %v251_v57  ;;  %v253_v2 = vld [vmem:[%s1139_s3 + $0xe0] sm:$0xff] }
  0x10   :  { %v690_v0 = vpack.c.bf16 %v58_v60, %v57_v59  ;;  %v42_v1 = vld [vmem:[%s1137_s2 + $0x78] sm:$0xff]  ;;  %v254_v4 = vld [vmem:[%s1139_s3 + $0xe8] sm:$0xff]  ;;  %v223_v7 = vld [vmem:[%s1139_s3] sm:$0xff]  ;;  %v65_v60 = vlaneseq }
  0x11   :  { %677 = vmatpush3.bf16.msra.mxu0 %v676_v32  ;;  %703 = vmatpush3.bf16.msk.msra.mxu1 %vm702_vm3, %v701_v43  ;;  %v692_v5 = vpack.c.bf16 %v42_v1, %v41_v62  ;;  %v711_v6 = vpack.c.bf16 %v254_v4, %v253_v2  ;;  %v224_v9 = vld [vmem:[%s1139_s3 + $0x8] sm:$0xff]  ;;  %v24_v10 = vld [vmem:[%s1138_s0] sm:$0xff]  ;;  %v225_v12 = vld [vmem:[%s1139_s3 + $0x10] sm:$0xff] }
  0x12   :  { %679 = vmatprep.subr.bf16.mxu0 %v678_v36  ;;  %704 = vmatprep.subr.bf16.mxu1 %v784_v3  ;;  %v723_v11 = vpack.c.bf16 %v224_v9, %v223_v7  ;;  %v226_v13 = vld [vmem:[%s1139_s3 + $0x18] sm:$0xff]  ;;  %v227_v15 = vld [vmem:[%s1139_s3 + $0x20] sm:$0xff]  ;;  %v228_v16 = vld [vmem:[%s1139_s3 + $0x28] sm:$0xff] }
  0x13   :  { %v726_v14 = vpack.c.bf16 %v226_v13, %v225_v12  ;;  %v729_v17 = vpack.c.bf16 %v228_v16, %v227_v15  ;;  %v229_v18 = vld [vmem:[%s1139_s3 + $0x30] sm:$0xff]  ;;  %v230_v19 = vld [vmem:[%s1139_s3 + $0x38] sm:$0xff]  ;;  %v231_v21 = vld [vmem:[%s1139_s3 + $0x40] sm:$0xff] }
  0x14   :  { %606 = vmatmul.mubr.msk.f32.vlgmr.msra.gmra.mrb[0].mxu1 %vm69_vm4, %v26_v53  ;;  %v732_v20 = vpack.c.bf16 %v230_v19, %v229_v18  ;;  %v232_v22 = vld [vmem:[%s1139_s3 + $0x48] sm:$0xff]  ;;  %v233_v24 = vld [vmem:[%s1139_s3 + $0x50] sm:$0xff]  ;;  %v234_v25 = vld [vmem:[%s1139_s3 + $0x58] sm:$0xff] }
  0x15   :  { %681 = vmatpush3.bf16.msra.mxu0 %v680_v42  ;;  %706 = vmatpush3.bf16.msra.mxu1 %v705_v54  ;;  %v735_v23 = vpack.c.bf16 %v232_v22, %v231_v21  ;;  %v738_v26 = vpack.c.bf16 %v234_v25, %v233_v24  ;;  %v235_v27 = vld [vmem:[%s1139_s3 + $0x60] sm:$0xff]  ;;  %v236_v28 = vld [vmem:[%s1139_s3 + $0x68] sm:$0xff]  ;;  %v237_v30 = vld [vmem:[%s1139_s3 + $0x70] sm:$0xff] }
  0x16   :  { %683 = vmatprep.subr.bf16.mxu0 %v682_v44  ;;  %707 = vmatprep.subr.bf16.mxu1 %v784_v3  ;;  %v741_v29 = vpack.c.bf16 %v236_v28, %v235_v27  ;;  %v238_v31 = vld [vmem:[%s1139_s3 + $0x78] sm:$0xff]  ;;  %v239_v33 = vld [vmem:[%s1139_s3 + $0x80] sm:$0xff]  ;;  %v240_v34 = vld [vmem:[%s1139_s3 + $0x88] sm:$0xff] }
  0x17   :  { %632 = vmatprep.mubr.msk.f32.mxu1 %vm785_vm0, %v786_v8  ;;  %v744_v32 = vpack.c.bf16 %v238_v31, %v237_v30  ;;  %v747_v35 = vpack.c.bf16 %v240_v34, %v239_v33  ;;  %v241_v36 = vld [vmem:[%s1139_s3 + $0x90] sm:$0xff]  ;;  %v242_v37 = vld [vmem:[%s1139_s3 + $0x98] sm:$0xff]  ;;  %v243_v42 = vld [vmem:[%s1139_s3 + $0xa0] sm:$0xff] }
  0x18   :  { %v750_v38 = vpack.c.bf16 %v242_v37, %v241_v36  ;;  %v255_v39 = vld [vmem:[%s1139_s3 + $0xf0] sm:$0xff]  ;;  %v256_v40 = vld [vmem:[%s1139_s3 + $0xf8] sm:$0xff]  ;;  %v244_v43 = vld [vmem:[%s1139_s3 + $0xa8] sm:$0xff] }
  0x19   :  { %685 = vmatpush3.bf16.msra.mxu0 %v684_v51  ;;  %709 = vmatpush3.bf16.msra.mxu1 %v708_v63  ;;  %v714_v41 = vpack.c.bf16 %v256_v40, %v255_v39  ;;  %v753_v44 = vpack.c.bf16 %v244_v43, %v243_v42  ;;  %v257_v45 = vld [vmem:[%s1139_s3 + $0x100] sm:$0xff]  ;;  %v258_v46 = vld [vmem:[%s1139_s3 + $0x108] sm:$0xff]  ;;  %v245_v48 = vld [vmem:[%s1139_s3 + $0xb0] sm:$0xff]  ;;  %v66_v63 = vshrl.u32 %v65_v60, 7 }
  0x1a   :  { %687 = vmatprep.subr.bf16.mxu0 %v686_v55  ;;  %710 = vmatprep.subr.bf16.mxu1 %v784_v3  ;;  %v717_v47 = vpack.c.bf16 %v258_v46, %v257_v45  ;;  %v246_v49 = vld [vmem:[%s1139_s3 + $0xb8] sm:$0xff]  ;;  %v218_v50 = vld [vmem:[%s1140_s1 + $0x8] sm:$0xff]  ;;  %v259_v52 = vld [vmem:[%s1139_s3 + $0x110] sm:$0xff] }
  0x1b   :  { %v756_v51 = vpack.c.bf16 %v246_v49, %v245_v48  ;;  %v260_v53 = vld [vmem:[%s1139_s3 + $0x118] sm:$0xff]  ;;  %v220_v54 = vmul.f32 0.2, %v218_v50  ;;  %v217_v55 = vld [vmem:[%s1140_s1] sm:$0xff]  ;;  %v418_v15 = vld [vmem:[%s1142_s4 + $0x10] sm:$0xff]  ;;  %v411_v31 = vsub.s32 1, %v66_v63 }
  0x1c   :  { %v720_v56 = vpack.c.bf16 %v260_v53, %v259_v52  ;;  %v219_v57 = vmul.f32 0.2, %v217_v55  ;;  %v23_v1 = vld [vmem:[%s1141_s5] sm:$0x7]  ;;  %v419_v16 = vld [vmem:[%s1142_s4 + $0x18] sm:$0xff]  ;;  %v421_v19 = vld [vmem:[%s1142_s4 + $0x28] sm:$0xff] }
  0x1d   :  { %689 = vmatpush3.bf16.msra.mxu0 %v688_v61  ;;  %712 = vmatpush3.bf16.msra.mxu1 %v711_v6  ;;  %v222_v58 = vmax.f32 %v218_v50, %v220_v54  ;;  %v420_v18 = vld [vmem:[%s1142_s4 + $0x20] sm:$0xff]  ;;  %v422_v21 = vld [vmem:[%s1142_s4 + $0x30] sm:$0xff]  ;;  %v425_v25 = vld [vmem:[%s1142_s4 + $0x48] sm:$0xff] }
  0x1e   :  { %691 = vmatprep.subr.bf16.mxu0 %v690_v0  ;;  %713 = vmatprep.subr.bf16.mxu1 %v784_v3  ;;  %v221_v59 = vmax.f32 %v217_v55, %v219_v57  ;;  %v67_v0 = vsub.s32 0, %v66_v63  ;;  %v424_v24 = vld [vmem:[%s1142_s4 + $0x40] sm:$0xff]  ;;  %v426_v28 = vld [vmem:[%s1142_s4 + $0x50] sm:$0xff] }
  0x1f   :  { %v771_v27 = vpack.c.bf16 %v425_v25, %v424_v24 }
  0x20   :  { %v68_v4 = vrot.slane %v23_v1, %v67_v0 }
  0x21   :  { %693 = vmatpush3.bf16.msra.mxu0 %v692_v5  ;;  %715 = vmatpush3.bf16.msra.mxu1 %v714_v41 }
  0x22   :  { %722 = vmatprep.subr.bf16.mxu0 %v784_v3  ;;  %716 = vmatprep.subr.bf16.mxu1 %v784_v3 }
  0x24   :  { %142 = vmatmul.mubr.f32.vlgmr.msra.gmra.mrb[0].mxu0 %v24_v10  ;;  %v416_v10 = vld [vmem:[%s1142_s4] sm:$0xff] }
  0x25   :  { %724 = vmatpush1.bf16.msra.mxu0 %v723_v11  ;;  %718 = vmatpush3.bf16.msra.mxu1 %v717_v47  ;;  %v417_v11 = vld [vmem:[%s1142_s4 + $0x8] sm:$0xff] }
  0x26   :  { %725 = vmatprep.subr.bf16.mxu0 %v784_v3  ;;  %719 = vmatprep.subr.bf16.mxu1 %v784_v3  ;;  %v759_v13 = vpack.c.bf16 %v417_v11, %v416_v10 }
  0x27   :  { %522 = vmatprep.mubr.msk.f32.mxu0 %vm335_vm5, %v222_v58 }
  0x29   :  { %727 = vmatpush1.bf16.msra.mxu0 %v726_v14  ;;  %721 = vmatpush3.bf16.msra.mxu1 %v720_v56 }
  0x2a   :  { %728 = vmatprep.subr.bf16.mxu0 %v784_v3  ;;  %758 = vmatprep.subr.bf16.mxu1 %v784_v3 }
  0x2d   :  { %730 = vmatpush1.bf16.msra.mxu0 %v729_v17  ;;  %v762_v17 = vpack.c.bf16 %v419_v16, %v418_v15 }
  0x2e   :  { %731 = vmatprep.subr.bf16.mxu0 %v784_v3 }
  0x31   :  { %733 = vmatpush1.bf16.msra.mxu0 %v732_v20  ;;  %v765_v20 = vpack.c.bf16 %v421_v19, %v420_v18 }
  0x32   :  { %734 = vmatprep.subr.bf16.mxu0 %v784_v3 }
  0x35   :  { %736 = vmatpush1.bf16.msra.mxu0 %v735_v23 }
  0x36   :  { %737 = vmatprep.subr.bf16.mxu0 %v784_v3 }
  0x39   :  { %739 = vmatpush1.bf16.msra.mxu0 %v738_v26 }
  0x3a   :  { %740 = vmatprep.subr.bf16.mxu0 %v784_v3 }
  0x3d   :  { %742 = vmatpush1.bf16.msra.mxu0 %v741_v29  ;;  %v427_v29 = vld [vmem:[%s1142_s4 + $0x58] sm:$0xff] }
  0x3e   :  { %743 = vmatprep.subr.bf16.mxu0 %v784_v3  ;;  %v774_v30 = vpack.c.bf16 %v427_v29, %v426_v28 }
  0x41   :  { %745 = vmatpush1.bf16.msra.mxu0 %v744_v32  ;;  %v412_v32 = vrot.slane %v23_v1, %v411_v31 }
  0x42   :  { %746 = vmatprep.subr.bf16.mxu0 %v784_v3 }
  0x45   :  { %748 = vmatpush1.bf16.msra.mxu0 %v747_v35 }
  0x46   :  { %749 = vmatprep.subr.bf16.mxu0 %v784_v3 }
  0x49   :  { %751 = vmatpush1.bf16.msra.mxu0 %v750_v38 }
  0x4a   :  { %752 = vmatprep.subr.bf16.mxu0 %v784_v3 }
  0x4d   :  { %754 = vmatpush1.bf16.msra.mxu0 %v753_v44 }
  0x4e   :  { %755 = vmatprep.subr.bf16.mxu0 %v784_v3 }
  0x51   :  { %757 = vmatpush1.bf16.msra.mxu0 %v756_v51 }
  0x54   :  { %404 = vmatmul.mubr.f32.vlgmr.msra.gmra.mrb[2].mxu0 %v221_v59 }
  0xe7   :  { %v213_v61 = vpop.f32.mrb[0].mxu1 }
  0xe8   :  { %v607_v62 = vpop.f32.mrb[1].mxu1 }
  0xf7   :  { %v557_v2 = vpop.f32.mrb[0].mxu0 }
  0xf8   :  { %v558_v5 = vpop.f32.mrb[1].mxu0 }
  0xf9   :  { %v559_v6 = vadd.f32 %v558_v5, %v557_v2 }
  0xfb   :  { %v144_v7 = vadd.f32 %v559_v6, %v68_v4 }
  0xfd   :  { %v214_v9 = vadd.f32 %v213_v61, %v144_v7 }
  0xff   :  { %v247_v12 = vmul.f32 0.2, %v214_v9 }
 0x101   :  { %v248_v14 = vmax.f32 %v214_v9, %v247_v12 }
 0x103   :  { %633 = vmatmul.mubr.msk.f32.vlgmr.msra.gmra.mrb[2].mxu1 %vm261_vm6, %v248_v14 }
 0x104   :  { %760 = vmatpush3.bf16.msra.mxu1 %v759_v13  ;;  %659 = vmatprep.mubr.msk.f32.mxu1 %vm785_vm0, %v786_v8  ;;  %v423_v8 = vld [vmem:[%s1142_s4 + $0x38] sm:$0xff] }
 0x105   :  { %761 = vmatprep.subr.bf16.mxu1 %v784_v3  ;;  %v768_v22 = vpack.c.bf16 %v423_v8, %v422_v21 }
 0x108   :  { %763 = vmatpush3.bf16.msra.mxu1 %v762_v17 }
 0x109   :  { %764 = vmatprep.subr.bf16.mxu1 %v784_v3 }
 0x10c   :  { %766 = vmatpush3.bf16.msra.mxu1 %v765_v20 }
 0x10d   :  { %767 = vmatprep.subr.bf16.mxu1 %v784_v3 }
 0x110   :  { %769 = vmatpush3.bf16.msra.mxu1 %v768_v22 }
 0x111   :  { %770 = vmatprep.subr.bf16.mxu1 %v784_v3 }
 0x114   :  { %772 = vmatpush3.bf16.msra.mxu1 %v771_v27 }
 0x115   :  { %773 = vmatprep.subr.bf16.mxu1 %v784_v3  ;;  %v430_v3 = vsub.s32 2, %v66_v63 }
 0x117   :  { %v431_v39 = vrot.slane %v23_v1, %v430_v3 }
 0x118   :  { %775 = vmatpush3.bf16.msra.mxu1 %v774_v30 }
 0x127   :  { %v405_v23 = vpop.f32.mrb[2].mxu0 }
 0x128   :  { %v407_v26 = vpop.f32.mrb[3].mxu0 }
 0x1d6   :  { %v331_v33 = vpop.f32.mrb[2].mxu1 }
 0x1d7   :  { %v406_v34 = vadd.f32 %v405_v23, %v331_v33  ;;  %v634_v35 = vpop.f32.mrb[3].mxu1 }
 0x1d9   :  { %v413_v36 = vadd.f32 %v412_v32, %v406_v34 }
 0x1db   :  { %v414_v37 = vmul.f32 0.2, %v413_v36 }
 0x1dd   :  { %v415_v38 = vmax.f32 %v413_v36, %v414_v37 }
 0x1df   :  { %660 = vmatmul.mubr.msk.f32.vlgmr.msra.gmra.mrb[4].mxu1 %vm261_vm6, %v415_v38 }
 0x2b2   :  { %v501_v40 = vpop.f32.mrb[4].mxu1 }
 0x2b3   :  { %v502_v41 = vadd.f32 %v501_v40, %v431_v39  ;;  %v661_v42 = vpop.f32.mrb[5].mxu1 }
 0x2b5   :  { %v524_v43 = vmul.f32 -1.442695, %v502_v41 }
 0x2b7   :  { %780 = vpow2.f32 %v524_v43 }
 0x2c1   :  { %v781_v44 = vpop.eup %780 }
 0x2c2   :  { %v508_v45 = vadd.f32 1.0, %v781_v44 }
 0x2c4   :  { %782 = vrcp.f32 %v508_v45 }
 0x2ce   :  { %v783_v46 = vpop.eup %782 }
 0x2cf   :  { %v511_v47 = vmax.f32 %v783_v46, 1e-07 }
 0x2d1   :  { %v512_v48 = vmin.f32 %v511_v47, 0.9999999 }
 0x2d3   :  { %514 = vst.msk [vmem:[%s1143_s6] sm:$0xff] %vm513_vm7, %v512_v48 }

</bundles_post_ra>
